<compile_context>
chip_gen: v7x
topology: tpu7x:2x2x1
jax: 0.10.0
libtpu: 0.0.40
codegen_flags: <defaults>
</compile_context>

<pallas_src>
import jax
import jax.numpy as jnp
from jax.experimental import pallas as pl
from jax.experimental.pallas import tpu as pltpu

_LANE = 128


def _vmem_budget():
    """Returns (per-input block bytes target in f32 terms, vmem_limit_bytes)."""
    try:
        info = pltpu.get_tpu_info()
        cap = int(getattr(info, "vmem_capacity_bytes", 64 * 1024 * 1024))
    except Exception:
        cap = 64 * 1024 * 1024                       # conservative (v7x-sized)
    if cap >= 96 * 1024 * 1024:                      # v5e / v6e: 128 MiB VMEM
        return 8 * 1024 * 1024, 80 * 1024 * 1024
    return 6 * 1024 * 1024, 48 * 1024 * 1024         # v7x: 64 MiB VMEM per TC


def _make_wce_kernel(C, TS, rows, grid_j, nchunk, may_need_mask):
    """Kernel over (1, C, TS, 128) tiles, accumulating into a (1, 2, C, 128) block."""

    def kernel(p_ref, t_ref, out_ref):
        j = pl.program_id(1)

        @pl.when(j == 0)
        def _init():
            out_ref[...] = jnp.zeros_like(out_ref)

        def accumulate(valid):  # valid: None or (TS, 128) bool row-validity mask
            # ---- per-channel, lane-wise partial sums of -t * log(p + 1e-10) ----
            ce_rows = []
            for c in range(C):
                pc = p_ref[0, c].astype(jnp.float32)            # (TS, 128)
                tc = t_ref[0, c].astype(jnp.float32)
                ce_c = tc * jnp.log(pc + 1e-10)
                if valid is not None:
                    ce_c = jnp.where(valid, ce_c, 0.0)          # select: NaN-safe
                ce_rows.append(-jnp.sum(ce_c, axis=0, keepdims=True))  # (1, 128)

            # ---- single-pass channel argmax (first-max tie-break, native dtype) ----
            m = t_ref[0, 0]                                     # (TS, 128)
            idx = jnp.zeros((TS, _LANE), jnp.int32)
            for c in range(1, C):
                tc = t_ref[0, c]
                gt = tc > m
                idx = jnp.where(gt, c, idx)
                m = jnp.where(gt, tc, m)
            if valid is not None:
                idx = jnp.where(valid, idx, C)                  # C == "no class"

            cnt_rows = []
            for c in range(C):
                cnt_rows.append(
                    jnp.sum((idx == c).astype(jnp.float32), axis=0, keepdims=True))

            out_ref[0, 0] += jnp.concatenate(ce_rows, axis=0)   # (C, 128) CE sums
            out_ref[0, 1] += jnp.concatenate(cnt_rows, axis=0)  # (C, 128) counts

        if not may_need_mask:
            accumulate(None)
        else:
            if nchunk == 1:
                gb = j
            else:
                gb = (pl.program_id(0) % nchunk) * grid_j + j
            needs_mask = (gb + 1) * TS > rows                   # scalar, runtime

            @pl.when(jnp.logical_not(needs_mask))
            def _full():
                accumulate(None)

            @pl.when(needs_mask)
            def _tail():
                row = jax.lax.broadcasted_iota(jnp.int32, (TS, _LANE), 0) + gb * TS
                accumulate(row < rows)

    return kernel


def wce_loss(predict, target, num_classes=None, *, block_bytes=None):
    """predict, target: (N, C, H, W). Returns scalar WCE loss (C == num_classes)."""
    N, C, H, W = predict.shape
    if num_classes is None:
        num_classes = C
    assert num_classes == C, "WCELoss semantics require C == num_classes"
    HW = H * W

    # Pad HW once to a multiple of 128 lanes (no-op when already aligned); padded
    # voxels have target == 0 -> zero CE and argmax class 0, corrected exactly in
    # the epilogue.  Then view as (N, C, rows, 128): dense (sublane, lane) tiles.
    HWp = ((HW + _LANE - 1) // _LANE) * _LANE
    p = predict.reshape(N, C, HW)
    t = target.reshape(N, C, HW)
    if HWp != HW:
        p = jnp.pad(p, ((0, 0), (0, 0), (0, HWp - HW)))
        t = jnp.pad(t, ((0, 0), (0, 0), (0, HWp - HW)))
    rows = HWp // _LANE
    p4 = p.reshape(N, C, rows, _LANE)
    t4 = t.reshape(N, C, rows, _LANE)

    # Block sizing in f32 terms (in-kernel upcast + f32 temporaries dominate).
    target_bytes, vmem_limit = _vmem_budget()
    if block_bytes is not None:
        target_bytes = block_bytes
    ts_target = max(8, (target_bytes // (C * _LANE * 4)) // 8 * 8)
    if rows <= ts_target:
        TS = rows                      # full sublane extent (allowed even if %8 != 0)
        blocks_per_image = 1
    else:
        TS = ts_target                 # multiple of 8, tail masked in-kernel
        blocks_per_image = pl.cdiv(rows, TS)

    # Parallel axis: batch fused with an HW-chunk split so the parallel grid axis
    # has >= 2 blocks even for N == 1 / odd N (feeds both v7x TensorCores).
    nchunk = 2 if (N % 2 == 1 and blocks_per_image >= 2) else 1
    grid_j = pl.cdiv(blocks_per_image, nchunk)
    P = N * nchunk
    need_clamp = nchunk * grid_j != blocks_per_image
    may_need_mask = (blocks_per_image * TS != rows) or need_clamp

    if nchunk == 1:
        def in_index_map(pi, j):
            return (pi, 0, j, 0)
    else:
        def in_index_map(pi, j):
            gb = (pi % nchunk) * grid_j + j
            if need_clamp:
                gb = jnp.minimum(gb, blocks_per_image - 1)   # keep DMA in-bounds
            return (pi // nchunk, 0, gb, 0)

    out = pl.pallas_call(
        _make_wce_kernel(C, TS, rows, grid_j, nchunk, may_need_mask),
        out_shape=jax.ShapeDtypeStruct((P, 2, C, _LANE), jnp.float32),
        grid_spec=pltpu.PrefetchScalarGridSpec(
            num_scalar_prefetch=0,
            grid=(P, grid_j),
            in_specs=[
                pl.BlockSpec((1, C, TS, _LANE), in_index_map),
                pl.BlockSpec((1, C, TS, _LANE), in_index_map),
            ],
            out_specs=pl.BlockSpec((1, 2, C, _LANE), lambda pi, j: (pi, 0, 0, 0)),
        ),
        compiler_params=pltpu.CompilerParams(
            dimension_semantics=("parallel", "arbitrary"),
            vmem_limit_bytes=vmem_limit,
        ),
        cost_estimate=pl.CostEstimate(
            flops=int(N * HWp * C * 14),
            transcendentals=int(N * C * HWp),
            bytes_accessed=int(p4.size * p4.dtype.itemsize
                               + t4.size * t4.dtype.itemsize
                               + P * 2 * C * _LANE * 4),
        ),
    )(p4, t4)

    # Tiny epilogue on a (P, 2, C, 128) array: cross-lane reduce, exact pad-count
    # correction, class weights and the weighted sum.
    ce_sum = jnp.sum(out[:, 0], axis=(0, 2))                    # (C,)
    counts = jnp.sum(out[:, 1], axis=(0, 2))                    # (C,)
    pad_voxels = N * (HWp - HW)
    if pad_voxels:
        counts = counts.at[0].add(jnp.float32(-pad_voxels))     # pads argmax to class 0
    voxels_sum = jnp.float32(N * H * W)
    ce_loss = ce_sum / voxels_sum
    weights = jnp.where(counts > 0,
                        jnp.log(voxels_sum / (counts + 1e-10)),
                        0.0)
    return jnp.sum(weights * ce_loss)


def _reference_wce_loss(predict, target, num_classes):
    # Pure-JAX mirror of the PyTorch module for a correctness check.
    ce_loss = jnp.mean(-target * jnp.log(predict + 1e-10), axis=(0, 2, 3))
    mask = jnp.argmax(target, axis=1)
    voxels_sum = jnp.float32(mask.size)
    counts = jnp.stack(
        [jnp.sum(mask == i) for i in range(num_classes)]).astype(jnp.float32)
    weights = jnp.where(counts > 0,
                        jnp.log(voxels_sum / (counts + 1e-10)),
                        0.0)
    return jnp.sum(weights * ce_loss)


if __name__ == "__main__":
    def make_case(key, N, C, H, W):
        k1, k2 = jax.random.split(key)
        logits = jax.random.normal(k1, (N, C, H, W), dtype=jnp.float32)
        predict = jax.nn.softmax(logits, axis=1)                 # probabilities
        labels = jax.random.randint(k2, (N, H, W), 0, C)
        target = jax.nn.one_hot(labels, C, axis=1, dtype=jnp.float32)
        return predict, target

    k0, k1, k2 = jax.random.split(jax.random.PRNGKey(0), 3)

    # Main case (module default num_classes = 3).
    predict, target = make_case(k0, 2, 3, 16, 16)
    out = wce_loss(predict, target)
    jax.block_until_ready(out)
    ref = _reference_wce_loss(predict, target, 3)
    assert jnp.allclose(out, ref, atol=1e-5, rtol=1e-5), (out, ref)

    # Exercise HW-pad + tail-mask + odd-batch chunked-parallel paths (tiny blocks).
    p2, t2 = make_case(k1, 1, 3, 33, 40)            # HW=1320 -> padded to 1408
    out2 = wce_loss(p2, t2, block_bytes=3 * 8 * 128 * 4)
    ref2 = _reference_wce_loss(p2, t2, 3)
    assert jnp.allclose(out2, ref2, atol=1e-5, rtol=1e-5), (out2, ref2)

    # Exercise the clamped (fully-masked) duplicate-block path (3 blocks, 2 chunks).
    p3, t3 = make_case(k2, 1, 3, 48, 60)            # 23 row-tiles -> 3 blocks
    out3 = wce_loss(p3, t3, block_bytes=3 * 8 * 128 * 4)
    ref3 = _reference_wce_loss(p3, t3, 3)
    assert jnp.allclose(out3, ref3, atol=1e-5, rtol=1e-5), (out3, ref3)

    print("KERNEL_OK")
</pallas_src>

<mosaic_0001>
module attributes {stable_mosaic.version = 11 : i64} {
  func.func @kernel(%arg0: i32, %arg1: i32, %arg2: memref<1x3x2x128xf32, #tpu.memory_space<vmem>>, %arg3: memref<1x3x2x128xf32, #tpu.memory_space<vmem>>, %arg4: memref<1x2x3x128xf32, #tpu.memory_space<vmem>>) attributes {dimension_semantics = [#tpu.dimension_semantics<parallel>, #tpu.dimension_semantics<arbitrary>], iteration_bounds = array<i64: 2, 1>, scalar_prefetch = 0 : i64, scratch_operands = 0 : i64, tpu.core_type = #tpu.core_type<tc>, window_params = [{transform_indices = @transform_0, window_bounds = array<i64: 1, 3, 2, 128>}, {transform_indices = @transform_1, window_bounds = array<i64: 1, 3, 2, 128>}, {transform_indices = @transform_2, window_bounds = array<i64: 1, 2, 3, 128>}]} {
    %c0_i32 = arith.constant 0 : i32
    %0 = arith.cmpi eq, %arg1, %c0_i32 : i32
    %1 = arith.extui %0 : i1 to i32
    %c0_i32_0 = arith.constant 0 : i32
    %2 = arith.cmpi ne, %1, %c0_i32_0 : i32
    scf.if %2 {
      %cst_65 = arith.constant 0.000000e+00 : f32
      %85 = vector.broadcast %cst_65 : f32 to vector<1x2x3x128xf32>
      %c0_66 = arith.constant 0 : index
      %c0_67 = arith.constant 0 : index
      %c0_68 = arith.constant 0 : index
      %c0_69 = arith.constant 0 : index
      %86 = vector.load %arg4[%c0_66, %c0_67, %c0_68, %c0_69] : memref<1x2x3x128xf32, #tpu.memory_space<vmem>>, vector<1x2x3x128xf32>
      tpu.vector_store %arg4[%c0_66, %c0_67, %c0_68, %c0_69], %85 {strides = array<i32>} : memref<1x2x3x128xf32, #tpu.memory_space<vmem>>, vector<1x2x3x128xf32>,
    } else {
    }
    %c0 = arith.constant 0 : index
    %c0_1 = arith.constant 0 : index
    %c0_2 = arith.constant 0 : index
    %c0_3 = arith.constant 0 : index
    %3 = vector.load %arg2[%c0, %c0_1, %c0_2, %c0_3] : memref<1x3x2x128xf32, #tpu.memory_space<vmem>>, vector<1x1x2x128xf32>
    %4 = vector.shape_cast %3 : vector<1x1x2x128xf32> to vector<2x128xf32>
    %c0_4 = arith.constant 0 : index
    %c0_5 = arith.constant 0 : index
    %c0_6 = arith.constant 0 : index
    %c0_7 = arith.constant 0 : index
    %5 = vector.load %arg3[%c0_4, %c0_5, %c0_6, %c0_7] : memref<1x3x2x128xf32, #tpu.memory_space<vmem>>, vector<1x1x2x128xf32>
    %6 = vector.shape_cast %5 : vector<1x1x2x128xf32> to vector<2x128xf32>
    %cst = arith.constant 1.000000e-10 : f32
    %7 = vector.broadcast %cst : f32 to vector<2x128xf32>
    %8 = arith.addf %4, %7 : vector<2x128xf32>
    %9 = math.log %8 : vector<2x128xf32>
    %10 = arith.mulf %6, %9 : vector<2x128xf32>
    %cst_8 = arith.constant dense<0.000000e+00> : vector<128xf32>
    %11 = vector.multi_reduction <add>, %10, %cst_8 [0] : vector<2x128xf32> to vector<128xf32>
    %12 = vector.shape_cast %11 : vector<128xf32> to vector<1x128xf32>
    %cst_9 = arith.constant 0.000000e+00 : f32
    %13 = vector.broadcast %cst_9 : f32 to vector<1x128xf32>
    %14 = arith.subf %13, %12 : vector<1x128xf32>
    %c0_10 = arith.constant 0 : index
    %c1 = arith.constant 1 : index
    %c0_11 = arith.constant 0 : index
    %c0_12 = arith.constant 0 : index
    %15 = vector.load %arg2[%c0_10, %c1, %c0_11, %c0_12] : memref<1x3x2x128xf32, #tpu.memory_space<vmem>>, vector<1x1x2x128xf32>
    %16 = vector.shape_cast %15 : vector<1x1x2x128xf32> to vector<2x128xf32>
    %c0_13 = arith.constant 0 : index
    %c1_14 = arith.constant 1 : index
    %c0_15 = arith.constant 0 : index
    %c0_16 = arith.constant 0 : index
    %17 = vector.load %arg3[%c0_13, %c1_14, %c0_15, %c0_16] : memref<1x3x2x128xf32, #tpu.memory_space<vmem>>, vector<1x1x2x128xf32>
    %18 = vector.shape_cast %17 : vector<1x1x2x128xf32> to vector<2x128xf32>
    %cst_17 = arith.constant 1.000000e-10 : f32
    %19 = vector.broadcast %cst_17 : f32 to vector<2x128xf32>
    %20 = arith.addf %16, %19 : vector<2x128xf32>
    %21 = math.log %20 : vector<2x128xf32>
    %22 = arith.mulf %18, %21 : vector<2x128xf32>
    %cst_18 = arith.constant dense<0.000000e+00> : vector<128xf32>
    %23 = vector.multi_reduction <add>, %22, %cst_18 [0] : vector<2x128xf32> to vector<128xf32>
    %24 = vector.shape_cast %23 : vector<128xf32> to vector<1x128xf32>
    %cst_19 = arith.constant 0.000000e+00 : f32
    %25 = vector.broadcast %cst_19 : f32 to vector<1x128xf32>
    %26 = arith.subf %25, %24 : vector<1x128xf32>
    %c0_20 = arith.constant 0 : index
    %c2 = arith.constant 2 : index
    %c0_21 = arith.constant 0 : index
    %c0_22 = arith.constant 0 : index
    %27 = vector.load %arg2[%c0_20, %c2, %c0_21, %c0_22] : memref<1x3x2x128xf32, #tpu.memory_space<vmem>>, vector<1x1x2x128xf32>
    %28 = vector.shape_cast %27 : vector<1x1x2x128xf32> to vector<2x128xf32>
    %c0_23 = arith.constant 0 : index
    %c2_24 = arith.constant 2 : index
    %c0_25 = arith.constant 0 : index
    %c0_26 = arith.constant 0 : index
    %29 = vector.load %arg3[%c0_23, %c2_24, %c0_25, %c0_26] : memref<1x3x2x128xf32, #tpu.memory_space<vmem>>, vector<1x1x2x128xf32>
    %30 = vector.shape_cast %29 : vector<1x1x2x128xf32> to vector<2x128xf32>
    %cst_27 = arith.constant 1.000000e-10 : f32
    %31 = vector.broadcast %cst_27 : f32 to vector<2x128xf32>
    %32 = arith.addf %28, %31 : vector<2x128xf32>
    %33 = math.log %32 : vector<2x128xf32>
    %34 = arith.mulf %30, %33 : vector<2x128xf32>
    %cst_28 = arith.constant dense<0.000000e+00> : vector<128xf32>
    %35 = vector.multi_reduction <add>, %34, %cst_28 [0] : vector<2x128xf32> to vector<128xf32>
    %36 = vector.shape_cast %35 : vector<128xf32> to vector<1x128xf32>
    %cst_29 = arith.constant 0.000000e+00 : f32
    %37 = vector.broadcast %cst_29 : f32 to vector<1x128xf32>
    %38 = arith.subf %37, %36 : vector<1x128xf32>
    %c0_30 = arith.constant 0 : index
    %c0_31 = arith.constant 0 : index
    %c0_32 = arith.constant 0 : index
    %c0_33 = arith.constant 0 : index
    %39 = vector.load %arg3[%c0_30, %c0_31, %c0_32, %c0_33] : memref<1x3x2x128xf32, #tpu.memory_space<vmem>>, vector<1x1x2x128xf32>
    %40 = vector.shape_cast %39 : vector<1x1x2x128xf32> to vector<2x128xf32>
    %c0_i32_34 = arith.constant 0 : i32
    %41 = vector.broadcast %c0_i32_34 : i32 to vector<2x128xi32>
    %c0_35 = arith.constant 0 : index
    %c1_36 = arith.constant 1 : index
    %c0_37 = arith.constant 0 : index
    %c0_38 = arith.constant 0 : index
    %42 = vector.load %arg3[%c0_35, %c1_36, %c0_37, %c0_38] : memref<1x3x2x128xf32, #tpu.memory_space<vmem>>, vector<1x1x2x128xf32>
    %43 = vector.shape_cast %42 : vector<1x1x2x128xf32> to vector<2x128xf32>
    %44 = arith.cmpf ogt, %43, %40 : vector<2x128xf32>
    %c1_i32 = arith.constant 1 : i32
    %45 = vector.broadcast %c1_i32 : i32 to vector<2x128xi32>
    %46 = arith.select %44, %45, %41 : vector<2x128xi1>, vector<2x128xi32>
    %47 = arith.select %44, %43, %40 : vector<2x128xi1>, vector<2x128xf32>
    %c0_39 = arith.constant 0 : index
    %c2_40 = arith.constant 2 : index
    %c0_41 = arith.constant 0 : index
    %c0_42 = arith.constant 0 : index
    %48 = vector.load %arg3[%c0_39, %c2_40, %c0_41, %c0_42] : memref<1x3x2x128xf32, #tpu.memory_space<vmem>>, vector<1x1x2x128xf32>
    %49 = vector.shape_cast %48 : vector<1x1x2x128xf32> to vector<2x128xf32>
    %50 = arith.cmpf ogt, %49, %47 : vector<2x128xf32>
    %c2_i32 = arith.constant 2 : i32
    %51 = vector.broadcast %c2_i32 : i32 to vector<2x128xi32>
    %52 = arith.select %50, %51, %46 : vector<2x128xi1>, vector<2x128xi32>
    %c0_i32_43 = arith.constant 0 : i32
    %53 = vector.broadcast %c0_i32_43 : i32 to vector<2x128xi32>
    %54 = arith.cmpi eq, %52, %53 : vector<2x128xi32>
    %55 = arith.extui %54 : vector<2x128xi1> to vector<2x128xi32>
    %56 = arith.sitofp %55 : vector<2x128xi32> to vector<2x128xf32>
    %cst_44 = arith.constant dense<0.000000e+00> : vector<128xf32>
    %57 = vector.multi_reduction <add>, %56, %cst_44 [0] : vector<2x128xf32> to vector<128xf32>
    %58 = vector.shape_cast %57 : vector<128xf32> to vector<1x128xf32>
    %c1_i32_45 = arith.constant 1 : i32
    %59 = vector.broadcast %c1_i32_45 : i32 to vector<2x128xi32>
    %60 = arith.cmpi eq, %52, %59 : vector<2x128xi32>
    %61 = arith.extui %60 : vector<2x128xi1> to vector<2x128xi32>
    %62 = arith.sitofp %61 : vector<2x128xi32> to vector<2x128xf32>
    %cst_46 = arith.constant dense<0.000000e+00> : vector<128xf32>
    %63 = vector.multi_reduction <add>, %62, %cst_46 [0] : vector<2x128xf32> to vector<128xf32>
    %64 = vector.shape_cast %63 : vector<128xf32> to vector<1x128xf32>
    %c2_i32_47 = arith.constant 2 : i32
    %65 = vector.broadcast %c2_i32_47 : i32 to vector<2x128xi32>
    %66 = arith.cmpi eq, %52, %65 : vector<2x128xi32>
    %67 = arith.extui %66 : vector<2x128xi1> to vector<2x128xi32>
    %68 = arith.sitofp %67 : vector<2x128xi32> to vector<2x128xf32>
    %cst_48 = arith.constant dense<0.000000e+00> : vector<128xf32>
    %69 = vector.multi_reduction <add>, %68, %cst_48 [0] : vector<2x128xf32> to vector<128xf32>
    %70 = vector.shape_cast %69 : vector<128xf32> to vector<1x128xf32>
    %c0_49 = arith.constant 0 : index
    %c0_50 = arith.constant 0 : index
    %c0_51 = arith.constant 0 : index
    %c0_52 = arith.constant 0 : index
    %71 = vector.load %arg4[%c0_49, %c0_50, %c0_51, %c0_52] : memref<1x2x3x128xf32, #tpu.memory_space<vmem>>, vector<1x1x3x128xf32>
    %72 = vector.shape_cast %71 : vector<1x1x3x128xf32> to vector<3x128xf32>
    %73 = tpu.concatenate %14, %26, %38 in 0 : vector<1x128xf32>, vector<1x128xf32>, vector<1x128xf32> -> vector<3x128xf32>
    %74 = arith.addf %72, %73 : vector<3x128xf32>
    %c0_53 = arith.constant 0 : index
    %c0_54 = arith.constant 0 : index
    %c0_55 = arith.constant 0 : index
    %c0_56 = arith.constant 0 : index
    %75 = vector.load %arg4[%c0_53, %c0_54, %c0_55, %c0_56] : memref<1x2x3x128xf32, #tpu.memory_space<vmem>>, vector<1x1x3x128xf32>
    %76 = vector.shape_cast %75 : vector<1x1x3x128xf32> to vector<3x128xf32>
    %77 = vector.shape_cast %74 : vector<3x128xf32> to vector<1x1x3x128xf32>
    tpu.vector_store %arg4[%c0_53, %c0_54, %c0_55, %c0_56], %77 {strides = array<i32>} : memref<1x2x3x128xf32, #tpu.memory_space<vmem>>, vector<1x1x3x128xf32>,
    %c0_57 = arith.constant 0 : index
    %c1_58 = arith.constant 1 : index
    %c0_59 = arith.constant 0 : index
    %c0_60 = arith.constant 0 : index
    %78 = vector.load %arg4[%c0_57, %c1_58, %c0_59, %c0_60] : memref<1x2x3x128xf32, #tpu.memory_space<vmem>>, vector<1x1x3x128xf32>
    %79 = vector.shape_cast %78 : vector<1x1x3x128xf32> to vector<3x128xf32>
    %80 = tpu.concatenate %58, %64, %70 in 0 : vector<1x128xf32>, vector<1x128xf32>, vector<1x128xf32> -> vector<3x128xf32>
    %81 = arith.addf %79, %80 : vector<3x128xf32>
    %c0_61 = arith.constant 0 : index
    %c1_62 = arith.constant 1 : index
    %c0_63 = arith.constant 0 : index
    %c0_64 = arith.constant 0 : index
    %82 = vector.load %arg4[%c0_61, %c1_62, %c0_63, %c0_64] : memref<1x2x3x128xf32, #tpu.memory_space<vmem>>, vector<1x1x3x128xf32>
    %83 = vector.shape_cast %82 : vector<1x1x3x128xf32> to vector<3x128xf32>
    %84 = vector.shape_cast %81 : vector<3x128xf32> to vector<1x1x3x128xf32>
    tpu.vector_store %arg4[%c0_61, %c1_62, %c0_63, %c0_64], %84 {strides = array<i32>} : memref<1x2x3x128xf32, #tpu.memory_space<vmem>>, vector<1x1x3x128xf32>,
    return
  }
  func.func @transform_0(%arg0: i32, %arg1: i32) -> (i32, i32, i32, i32) {
    %c0_i32 = arith.constant 0 : i32
    %c0_i32_0 = arith.constant 0 : i32
    %c0_i32_1 = arith.constant 0 : i32
    return %arg0, %c0_i32, %arg1, %c0_i32_0 : i32, i32, i32, i32
  }
  func.func @transform_1(%arg0: i32, %arg1: i32) -> (i32, i32, i32, i32) {
    %c0_i32 = arith.constant 0 : i32
    %c0_i32_0 = arith.constant 0 : i32
    %c0_i32_1 = arith.constant 0 : i32
    return %arg0, %c0_i32, %arg1, %c0_i32_0 : i32, i32, i32, i32
  }
  func.func @transform_2(%arg0: i32, %arg1: i32) -> (i32, i32, i32, i32) {
    %c0_i32 = arith.constant 0 : i32
    %c0_i32_0 = arith.constant 0 : i32
    %c0_i32_1 = arith.constant 0 : i32
    %c0_i32_2 = arith.constant 0 : i32
    return %arg0, %c0_i32, %c0_i32_0, %c0_i32_1 : i32, i32, i32, i32
  }
}

</mosaic_0001>

<bundles_post_ra>
// kernel: tpu_custom_call.1
= control target key start
LH: loop header
LB: loop body
LE: loop exit
PB: predicated region body
PF: predicated region fallthrough
CT: control target
= control target key end

     0   :  { %7 = vsyncpa [#allocation3], 0  ;;  %s853_s0 = inlined_call_operand.hbm [shape: f32[2,3,2,128], index: 0, kind: input, shape index: {}]   ;;  %s854_s1 = inlined_call_operand.hbm [shape: f32[2,3,2,128], index: 1, kind: input, shape index: {}]   ;;  %s855_s2 = inlined_call_operand.vmem [shape: f32[2,2,3,128], index: 2, kind: output, shape index: {}]  }
   0x1   :  { %9 = vsyncpa [#allocation3 + $0x1], 0 }
   0x2   :  { %10 = vsyncpa [#allocation5], 0 }
   0x3   :  { %12 = vsyncpa [#allocation5 + $0x1], 0  ;;  %s657_s9 = smov 0   ;;  %s659_s10 = smov 0  }
   0x4   :  { %s661_s11 = smov 0   ;;  %s663_s12 = smov 0  }
   0x5   :  { %s665_s13 = smov 0   ;;  %s667_s14 = smov 0  }
   0x6 LB: > { %s424_s15 = sadd.s32 4294967295, %s634_s14   ;;  %s30_s16 = sadd.s32 1, %s630_s13  ;;  %s634_s14 = sphi %s667_s14, %s18_s14   ;;  %s630_s13 = sphi %s665_s13, %s865_s13   ;;  %s626_s12 = sphi %s663_s12, %s864_s12   ;;  %s622_s11 = sphi %s661_s11, %s863_s11   ;;  %s618_s10 = sphi %s659_s10, %s862_s10   ;;  %s614_s9 = sphi %s657_s9, %s861_s9  }
   0x7   : > { %p32_p0 = scmp.ge.s32.totalorder %s30_s16, 2  ;;  %s39_s17 = sadd.s32 1, %s622_s11 }
   0x8   : > { %p46_p1 = scmp.ne.s32.totalorder %s622_s11, %s618_s10  ;;  %p47_p2 = scmp.eq.s32.totalorder %s634_s14, 0 }
   0x9   : > { %s867_s16 = smov (%p32_p0, %s30_s16), 0  ;;  %p52_p4 = scmp.ne.s32.totalorder %s618_s10, %s614_s9 }
   0xa   : > { %p48_p3 = por %p47_p2, %p46_p1  ;;  %s34_s18 = ssub.s32 %s630_s13, %s867_s16 }
   0xb   : > { %p53_p5 = scmp.eq.s32.totalorder %s424_s15, 0  ;;  %p37_p6 = scmp.eq.s32.totalorder %s34_s18, 0 }
   0xc   : > { %p461_p8 = scmp.lt.s32.totalorder %s634_s14, 2  ;;  %s705_s21 = sand.u32 1, %s622_s11  }
   0xd   : > { %p696_p7 = por %p53_p5, %p52_p4  ;;  %s446_s22 = smul.u32 96, %s630_s13 }
   0xe   : > { %s702_s20 = scalar_select %p37_p6, %s622_s11, %s39_s17  }
   0xf   : > { %s857_s19 = scalar_select %p696_p7, 1, 0 }
  0x10   : > { %s445_s23 = smul.u32 6, %s705_s21  ;;  %s714_s26 = scalar_lea.hbm %s853_s0, %s446_s22 }
  0x11   : > { %p716_p9 = pnand %p461_p8, %p48_p3  ;;  %s131_s30 = scalar_lea.sflag [#allocation3], %s705_s21 }
  0x12   : > { %s134_s28 = scalar_lea.vmem [#allocation2], %s445_s23  ;;  %s520_s3 = scalar_lea.hbm %s714_s26, 96 }
  0x13   : > { %s142_s29 = sshll.u32 %s134_s28, 4  ;;  %p521_p10 = scmp.ne.s32.totalorder %s714_s26, %s520_s3  ;;  %s722_s29 = int_to_ptr.vmem [resolvable:$true] %s142_s29 }
  0x14   : > { %p522_p11 = pneg %p716_p9  ;;  %s525_s6 = scalar_lea.hbm %s853_s0, 192 }
  0x15   : > { %p526_p0 = scmp.lt.u32.totalorder %s714_s26, %s853_s0  ;;  %p527_p1 = scmp.lt.u32.totalorder %s525_s6, %s520_s3 }
  0x16   : > { %p523_p12 = pnand %p522_p11, %p521_p10  ;;  %p529_p3 = scmp.lt.u32.totalorder %s520_s3, %s714_s26 }
  0x17   : > { %p528_p2 = por %p527_p1, %p526_p0 }
  0x18   : > { %p524_p13 = pneg %p523_p12 }
  0x19   : > { %p530_p4 = por %p529_p3, %p528_p2 }
  0x1b   : > { %p531_p5 = pnand %p530_p4, %p524_p13 }
  0x1d   : > { %534 = shalt.err (!%p531_p5)
}
  0x1e   : > { %s535_s9 = scalar_lea.vmem %s722_s29, 96  ;;  %s636_s15 = smov [#allocation2]  }
  0x1f   : > { %p536_p6 = scmp.ne.s32.totalorder %s722_s29, %s535_s9  ;;  %s540_s17 = sshll.u32 %s636_s15, 4  ;;  %s541_s17 = int_to_ptr.vmem [resolvable:$false] %s540_s17 }
  0x20   : > { %s542_s18 = scalar_lea.vmem %s541_s17, 192  ;;  %p543_p12 = scmp.lt.s32.totalorder %s722_s29, %s541_s17 }
  0x21   : > { %p538_p8 = pnand %p536_p6, %p522_p11  ;;  %p544_p0 = scmp.lt.s32.totalorder %s542_s18, %s535_s9 }
  0x23   : > { %p539_p10 = pneg %p538_p8  ;;  %p545_p1 = por %p544_p0, %p543_p12 }
  0x25   : > { %p546_p2 = pnand %p545_p1, %p539_p10 }
  0x27   : > { %549 = shalt.err (!%p546_p2)
}
  0x28   : > { %s637_s24 = smov 32   ;;  %s638_s25 = smov 2  }
  0x29   : > { %457 = dma.hbm_to_vmem [thread:$0]  (!%p716_p9), %s714_s26, 96, %s722_s29, %s131_s30, %s637_s24, %s637_s24, %s638_s25  }
  0x2a   : > { %p430_p13 = scmp.ge.s32.totalorder %s634_s14, 1  ;;  %p172_p3 = scmp.lt.s32.totalorder %s634_s14, 3 }
  0x2b   : > { %s766_s5 = scalar_lea.hbm %s854_s1, %s446_s22  ;;  %s156_s6 = scalar_lea.vmem [#allocation4], %s445_s23 }
  0x2c   : > { %p757_p4 = pnand %p430_p13, %p172_p3  ;;  %s164_s7 = sshll.u32 %s156_s6, 4  ;;  %s770_s7 = int_to_ptr.vmem [resolvable:$true] %s164_s7 }
  0x2d   : > { %s153_s26 = scalar_lea.sflag [#allocation5], %s705_s21  ;;  %s550_s29 = scalar_lea.hbm %s766_s5, 96 }
  0x2e   : > { %p551_p5 = scmp.ne.s32.totalorder %s766_s5, %s550_s29  ;;  %s555_s22 = scalar_lea.hbm %s854_s1, 192 }
  0x2f   : > { %p556_p10 = scmp.lt.u32.totalorder %s766_s5, %s854_s1  ;;  %p557_p12 = scmp.lt.u32.totalorder %s555_s22, %s550_s29 }
  0x30   : > { %p553_p6 = pnand %p551_p5, %p522_p11  ;;  %p559_p1 = scmp.lt.u32.totalorder %s550_s29, %s766_s5 }
  0x31   : > { %p558_p0 = por %p557_p12, %p556_p10 }
  0x32   : > { %p554_p8 = pneg %p553_p6 }
  0x33   : > { %p560_p2 = por %p559_p1, %p558_p0 }
  0x35   : > { %p561_p13 = pnand %p560_p2, %p554_p8 }
  0x37   : > { %564 = shalt.err (!%p561_p13)
}
  0x38   : > { %s565_s23 = scalar_lea.vmem %s770_s7, 96  ;;  %s639_s17 = smov [#allocation4]  }
  0x39   : > { %p566_p3 = scmp.ne.s32.totalorder %s770_s7, %s565_s23  ;;  %s570_s18 = sshll.u32 %s639_s17, 4  ;;  %s571_s18 = int_to_ptr.vmem [resolvable:$false] %s570_s18 }
  0x3a   : > { %s572_s3 = scalar_lea.vmem %s571_s18, 192  ;;  %p573_p7 = scmp.lt.s32.totalorder %s770_s7, %s571_s18 }
  0x3b   : > { %p568_p5 = pnand %p566_p3, %p522_p11  ;;  %p574_p10 = scmp.lt.s32.totalorder %s572_s3, %s565_s23 }
  0x3d   : > { %p569_p6 = pneg %p568_p5  ;;  %p575_p12 = por %p574_p10, %p573_p7 }
  0x3f   : > { %p576_p0 = pnand %p575_p12, %p569_p6 }
  0x41   : > { %579 = shalt.err (!%p576_p0)
}
  0x42   : > { %460 = dma.hbm_to_vmem [thread:$0]  (!%p716_p9), %s766_s5, 96, %s770_s7, %s153_s26, %s637_s24, %s637_s24, %s638_s25  }
  0x43   : > { %176 = sbr.rel (%p757_p4) target bundleno = 117 (0x75), region = 28  ;;  %s178_s4 = sand.u32 (!%p757_p4), 1, %s618_s10  }
  0x44   : > { %s449_s6 = smul.u32 (!%p757_p4), 6, %s178_s4  ;;  %s179_s29 = scalar_lea.sflag (!%p757_p4), [#allocation3], %s178_s4 }
  0x45   : > { %p860_p7 = scmp.ne.s32.totalorder (!%p757_p4), %s857_s19, 0 }
  0x46   : > { %s182_s30 = scalar_lea.vmem (!%p757_p4), [#allocation2], %s449_s6 }
  0x4a   : > { %605 = dma.done.wait (%p860_p7), %s179_s29, 96  }
  0x4b   : > { %607 = vsyncadd (%p860_p7), %s179_s29, 4294967200  ;;  %s188_s27 = scalar_lea.sflag [#allocation5], %s178_s4  ;;  %s191_s21 = scalar_lea.vmem [#allocation4], %s449_s6 }
  0x4c   : > { %609 = dma.done.wait (%p860_p7), %s188_s27, 96  }
  0x4d   : > { %611 = vsyncadd (%p860_p7), %s188_s27, 4294967200  ;;  %p217_p9 = scmp.lt.s32.totalorder %s626_s12, 1  ;;  %v640_v0 = vmov 0.0   ;;  %v228_v1 = vld [vmem:[%s182_s30] sm:$0x3]  ;;  %v641_v10 = vmov 0  }
  0x4e   : > { %v229_v2 = vld [vmem:[%s191_s21] sm:$0x3]  ;;  %v433_v3 = vld [vmem:[%s182_s30 + $0x2] sm:$0x3]  ;;  %v230_v4 = vadd.f32 1e-10, %v228_v1 }
  0x4f   : > { %s869_s12 = smov (!%p217_p9, %s626_s12), 1  ;;  %v434_v5 = vld [vmem:[%s191_s21 + $0x2] sm:$0x3]  ;;  %v247_v6 = vadd.f32 1e-10, %v433_v3  ;;  %vm234_vm5 = vcmask 1041408  }
  0x50   : > { %s444_s24 = sshll.u32 %s869_s12, 3  ;;  %v435_v7 = vld [vmem:[%s182_s30 + $0x4] sm:$0x3]  ;;  %v436_v8 = vld [vmem:[%s191_s21 + $0x4] sm:$0x3]  ;;  %vm275_vm0 = vcmp.gt.f32.partialorder %v434_v5, %v229_v2  ;;  %514 = vlog2.f32 %v230_v4  ;;  %vm311_vm6 = vcmask 1040384  }
  0x51   : > { %s817_s5 = scalar_lea.vmem %s855_s2, %s444_s24  ;;  %v263_v9 = vadd.f32 1e-10, %v435_v7  ;;  %v276_v11 = vsel %vm275_vm0, 1, %v641_v10  ;;  %v277_v12 = vsel %vm275_vm0, %v434_v5, %v229_v2  ;;  %516 = vlog2.f32 %v247_v6 }
  0x52   : > { %226 = vst [vmem:[%s817_s5] sm:$0x7] %v640_v0  ;;  %227 = vst [vmem:[%s817_s5 + $0x4] sm:$0x7] %v640_v0  ;;  %vm278_vm1 = vcmp.gt.f32.partialorder %v436_v8, %v277_v12 }
  0x53   : > { %518 = vlog2.f32 %v263_v9  ;;  %v279_v13 = vsel %vm278_vm1, 2, %v276_v11 }
  0x54   : > { %vm280_vm2 = vcmp.eq.s32.totalorder %v279_v13, 0  ;;  %vm290_vm3 = vcmp.eq.s32.totalorder %v279_v13, 1  ;;  %vm300_vm4 = vcmp.eq.s32.totalorder %v279_v13, 2 }
  0x55   : > { %v437_v14 = vsel %vm280_vm2, 1.0, %v640_v0  ;;  %v438_v15 = vsel %vm290_vm3, 1.0, %v640_v0  ;;  %v439_v16 = vsel %vm300_vm4, 1.0, %v640_v0 }
  0x56   : > { %v283_v17 = vsel %vm234_vm5, %v437_v14, 0.0  ;;  %v293_v18 = vsel %vm234_vm5, %v438_v15, 0.0  ;;  %v303_v19 = vsel %vm234_vm5, %v439_v16, 0.0 }
  0x57   : > { %v284_v20 = vrot.slane %v283_v17, 4  ;;  %v294_v21 = vrot.slane %v293_v18, 4  ;;  %v304_v22 = vrot.slane %v303_v19, 4 }
  0x59   : > { %v285_v23 = vadd.f32 %v284_v20, %v283_v17  ;;  %v295_v24 = vadd.f32 %v294_v21, %v293_v18  ;;  %v305_v25 = vadd.f32 %v304_v22, %v303_v19  ;;  %v440_v52 = vld [vmem:[%s817_s5 + $0x4] sm:$0x7]  ;;  %v310_v11 = vld [vmem:[%s817_s5] sm:$0x7] }
  0x5a   : > { %v515_v26 = vpop.eup %514 }
  0x5b   : > { %v286_v27 = vrot.slane %v285_v23, 2  ;;  %v296_v28 = vrot.slane %v295_v24, 2  ;;  %v306_v29 = vrot.slane %v305_v25, 2  ;;  %v517_v30 = vpop.eup %516  ;;  %v232_v31 = vmul.f32 0.6931472, %v515_v26 }
  0x5c   : > { %v249_v33 = vmul.f32 0.6931472, %v517_v30 }
  0x5d   : > { %v519_v32 = vpop.eup %518  ;;  %v287_v34 = vadd.f32 %v286_v27, %v285_v23  ;;  %v297_v35 = vadd.f32 %v296_v28, %v295_v24  ;;  %v307_v36 = vadd.f32 %v306_v29, %v305_v25  ;;  %v233_v37 = vmul.f32 %v232_v31, %v229_v2 }
  0x5e   : > { %v265_v38 = vmul.f32 0.6931472, %v519_v32  ;;  %v250_v39 = vmul.f32 %v434_v5, %v249_v33 }
  0x5f   : > { %v288_v40 = vrot.slane %v287_v34, 1  ;;  %v298_v41 = vrot.slane %v297_v35, 1  ;;  %v308_v42 = vrot.slane %v307_v36, 1  ;;  %v235_v44 = vsel %vm234_vm5, %v233_v37, 0.0 }
  0x60   : > { %v266_v43 = vmul.f32 %v436_v8, %v265_v38  ;;  %v236_v45 = vrot.slane %v235_v44, 4  ;;  %v251_v46 = vsel %vm234_vm5, %v250_v39, 0.0 }
  0x61   : > { %v289_v47 = vadd.f32 %v288_v40, %v287_v34  ;;  %v299_v48 = vadd.f32 %v298_v41, %v297_v35  ;;  %v252_v49 = vrot.slane %v251_v46, 4  ;;  %v309_v51 = vadd.f32 %v308_v42, %v307_v36 }
  0x62   : > { %v267_v50 = vsel %vm234_vm5, %v266_v43, 0.0  ;;  %v237_v53 = vadd.f32 %v236_v45, %v235_v44 }
  0x63   : > { %v268_v54 = vrot.slane %v267_v50, 4  ;;  %v318_v55 = vsel %vm311_vm6, %v289_v47, %v299_v48  ;;  %v253_v56 = vadd.f32 %v252_v49, %v251_v46 }
  0x64   : > { %v319_v57 = vsel %vm234_vm5, %v318_v55, %v309_v51  ;;  %v238_v58 = vrot.slane %v237_v53, 2 }
  0x65   : > { %v269_v59 = vadd.f32 %v268_v54, %v267_v50  ;;  %v320_v60 = vadd.f32 %v440_v52, %v319_v57  ;;  %v254_v61 = vrot.slane %v253_v56, 2 }
  0x66   : > { %v239_v62 = vadd.f32 %v238_v58, %v237_v53 }
  0x67   : > { %v270_v63 = vrot.slane %v269_v59, 2  ;;  %441 = vst [vmem:[%s817_s5 + $0x4] sm:$0x7] %v320_v60  ;;  %v255_v0 = vadd.f32 %v254_v61, %v253_v56 }
  0x68   : > { %v240_v1 = vrot.slane %v239_v62, 1 }
  0x69   : > { %v271_v2 = vadd.f32 %v270_v63, %v269_v59  ;;  %v256_v3 = vrot.slane %v255_v0, 1 }
  0x6a   : > { %v241_v4 = vadd.f32 %v240_v1, %v239_v62 }
  0x6b   : > { %v272_v5 = vrot.slane %v271_v2, 1  ;;  %v257_v6 = vadd.f32 %v256_v3, %v255_v0 }
  0x6c   : > { %v242_v7 = vsub.f32 0.0, %v241_v4 }
  0x6d   : > { %v273_v8 = vadd.f32 %v272_v5, %v271_v2  ;;  %v258_v9 = vsub.f32 0.0, %v257_v6 }
  0x6f   : > { %v274_v10 = vsub.f32 0.0, %v273_v8  ;;  %v312_v12 = vsel %vm311_vm6, %v242_v7, %v258_v9 }
  0x71   : > { %v313_v13 = vsel %vm234_vm5, %v312_v12, %v274_v10 }
  0x72   : > { %v314_v14 = vadd.f32 %v313_v13, %v310_v11 }
  0x74   : > { %315 = vst [vmem:[%s817_s5] sm:$0x7] %v314_v14 }
  0x75 PF: > { %s18_s14 = sadd.s32 1, %s634_s14   ;;  %s861_s9 = smov %s618_s10 }
  0x76   : > { %p15_p11 = scmp.ge.s32.totalorder %s18_s14, 4   ;;  %s862_s10 = smov %s622_s11 }
  0x77   : > { %s863_s11 = smov %s702_s20  ;;  %s864_s12 = smov %s630_s13 }
  0x78   : > { %s865_s13 = smov %s867_s16  ;;  %17 = sbr.rel (!%p15_p11) target bundleno = 6 (0x6), region = 90 }
  0x7f   :  { %343 = vsyncpa [#allocation3], 1 }
  0x80   :  { %345 = vsyncpa [#allocation3 + $0x1], 1 }
  0x81   :  { %346 = vsyncpa [#allocation5], 1 }
  0x82   :  { %348 = vsyncpa [#allocation5 + $0x1], 1 }

</bundles_post_ra>
